<compile_context>
chip_gen: v5e
topology: v5e:2x2
jax: 0.10.0
libtpu: 0.0.40
codegen_flags: <defaults>
</compile_context>

<pallas_src>
import functools

import jax
import jax.numpy as jnp
from jax.experimental import pallas as pl
from jax.experimental.pallas import tpu as pltpu

LANES = 128
# Combined (pred + target) bytes streamed per grid step (~2 MiB per input).
TARGET_BLOCK_BYTES = 4 * 1024 * 1024


def _min_sublanes(dtype) -> int:
    """Minimum sublane multiple for a dtype's native (S, 128) tiling."""
    bits = jnp.dtype(dtype).itemsize * 8
    return max(8, 256 // bits)  # 8 for 32-bit, 16 for 16-bit, 32 for 8-bit


def _dice_partial_kernel(pred_ref, target_ref, inter_ref, total_ref):
    """Per-core partial sums: inter += sum(sig(p)*t), total += sum(sig(p)+t).

    Grid is (n_split, blocks_per_core); axis 0 is "parallel" (megacore split),
    axis 1 is the "arbitrary" reduction axis.  Output blocks (1, 8, 128) are
    indexed only by the parallel axis, so they stay VMEM-resident across the
    reduction axis and act as fixed-size accumulators.
    """
    j = pl.program_id(1)

    @pl.when(j == 0)
    def _init():
        inter_ref[...] = jnp.zeros_like(inter_ref)
        total_ref[...] = jnp.zeros_like(total_ref)

    x = pred_ref[...].astype(jnp.float32)
    t = target_ref[...].astype(jnp.float32)
    # sigmoid(x) == 0.5 * (tanh(x/2) + 1): single EUP op, numerically stable.
    p = 0.5 * (jnp.tanh(0.5 * x) + 1.0)

    block_rows = pred_ref.shape[0]
    groups = block_rows // 8
    # Fold each block to an (8, 128) partial: tile-aligned sublane-group
    # reshape + axis-0 sum (pure elementwise VALU adds, no cross-lane XLU).
    inter_blk = jnp.sum((p * t).reshape(groups, 8, LANES), axis=0)
    total_blk = jnp.sum((p + t).reshape(groups, 8, LANES), axis=0)

    inter_ref[...] += inter_blk.reshape(1, 8, LANES)
    total_ref[...] += total_blk.reshape(1, 8, LANES)


@functools.partial(jax.jit, static_argnames=("smooth",))
def dice_loss(pred, target, smooth=1.0):
    """Pallas implementation of DiceLoss.forward(pred, target)."""
    p_flat = pred.reshape(-1)
    t_flat = target.reshape(-1)
    n = p_flat.shape[0]

    sub = max(_min_sublanes(pred.dtype), _min_sublanes(target.dtype))
    rows_total = n // LANES  # full 128-lane rows

    inter = jnp.zeros((), jnp.float32)
    total = jnp.zeros((), jnp.float32)
    bulk_elems = 0

    if rows_total >= sub:
        # Two-core split whenever there are at least two sublane-aligned blocks.
        n_split = 2 if rows_total >= 2 * sub else 1

        bytes_per_row = LANES * (
            jnp.dtype(pred.dtype).itemsize + jnp.dtype(target.dtype).itemsize)
        max_rows = max(sub, (TARGET_BLOCK_BYTES // bytes_per_row) // sub * sub)

        # Even number of equal-size blocks per core; the (tiny) leftover rows
        # plus the sub-128 remainder go to the jnp tail below.
        num_blocks = pl.cdiv(rows_total, max_rows)
        num_blocks = pl.cdiv(num_blocks, n_split) * n_split
        block_rows = (rows_total // num_blocks) // sub * sub

        if block_rows > 0:
            blocks_per_core = num_blocks // n_split
            rows_bulk = num_blocks * block_rows
            bulk_elems = rows_bulk * LANES

            # Contiguous prefix slice + reshape: a view, no HBM copy.
            p2d = p_flat[:bulk_elems].reshape(rows_bulk, LANES)
            t2d = t_flat[:bulk_elems].reshape(rows_bulk, LANES)

            def in_map(c, j):
                return (c * blocks_per_core + j, 0)

            def out_map(c, j):
                return (c, 0, 0)

            inter_p, total_p = pl.pallas_call(
                _dice_partial_kernel,
                out_shape=(
                    jax.ShapeDtypeStruct((n_split, 8, LANES), jnp.float32),
                    jax.ShapeDtypeStruct((n_split, 8, LANES), jnp.float32),
                ),
                grid=(n_split, blocks_per_core),
                in_specs=[
                    pl.BlockSpec((block_rows, LANES), in_map),
                    pl.BlockSpec((block_rows, LANES), in_map),
                ],
                out_specs=[
                    pl.BlockSpec((1, 8, LANES), out_map),
                    pl.BlockSpec((1, 8, LANES), out_map),
                ],
                compiler_params=pltpu.CompilerParams(
                    dimension_semantics=("parallel", "arbitrary"),
                    # ~8 MiB actually used; safe on v5e/v6e (128 MiB phys) and
                    # v7x (64 MiB phys per TC).
                    vmem_limit_bytes=32 * 1024 * 1024,
                ),
            )(p2d, t2d)

            inter = inter + jnp.sum(inter_p)
            total = total + jnp.sum(total_p)

    if bulk_elems < n:
        # Tiny tail (a few KiB at most for realistic sizes): fused jnp epilogue.
        p_tail = jax.nn.sigmoid(p_flat[bulk_elems:].astype(jnp.float32))
        t_tail = t_flat[bulk_elems:].astype(jnp.float32)
        inter = inter + jnp.sum(p_tail * t_tail)
        total = total + jnp.sum(p_tail) + jnp.sum(t_tail)

    return 1.0 - (2.0 * inter + smooth) / (total + smooth)


def dice_loss_ref(pred, target, smooth=1.0):
    p = jax.nn.sigmoid(pred.astype(jnp.float32)).reshape(-1)
    t = target.astype(jnp.float32).reshape(-1)
    inter = jnp.sum(p * t)
    dice = (2.0 * inter + smooth) / (jnp.sum(p) + jnp.sum(t) + smooth)
    return 1.0 - dice


if __name__ == "__main__":
    key = jax.random.PRNGKey(0)
    k1, k2 = jax.random.split(key)

    # NCHW logits and binary targets, shapes consistent with a segmentation loss.
    pred = jax.random.normal(k1, (2, 4, 16, 16), dtype=jnp.float32)
    target = (jax.random.uniform(k2, (2, 4, 16, 16)) > 0.5).astype(jnp.float32)

    loss = dice_loss(pred, target, smooth=1.0)
    loss = jax.block_until_ready(loss)

    ref = dice_loss_ref(pred, target, smooth=1.0)
    assert jnp.allclose(loss, ref, atol=1e-5, rtol=1e-5), (loss, ref)

    print("KERNEL_OK")
</pallas_src>

<mosaic_0001>
module attributes {stable_mosaic.version = 11 : i64} {
  func.func @_dice_partial_kernel(%arg0: i32, %arg1: i32, %arg2: memref<8x128xf32, #tpu.memory_space<vmem>>, %arg3: memref<8x128xf32, #tpu.memory_space<vmem>>, %arg4: memref<1x8x128xf32, #tpu.memory_space<vmem>>, %arg5: memref<1x8x128xf32, #tpu.memory_space<vmem>>) attributes {dimension_semantics = [#tpu.dimension_semantics<parallel>, #tpu.dimension_semantics<arbitrary>], iteration_bounds = array<i64: 2, 1>, scalar_prefetch = 0 : i64, scratch_operands = 0 : i64, tpu.core_type = #tpu.core_type<tc>, window_params = [{transform_indices = @transform_0, window_bounds = array<i64: 8, 128>}, {transform_indices = @transform_1, window_bounds = array<i64: 8, 128>}, {transform_indices = @transform_2, window_bounds = array<i64: 1, 8, 128>}, {transform_indices = @transform_3, window_bounds = array<i64: 1, 8, 128>}]} {
    %c0_i32 = arith.constant 0 : i32
    %0 = arith.cmpi eq, %arg1, %c0_i32 : i32
    %1 = arith.extui %0 : i1 to i32
    %c0_i32_0 = arith.constant 0 : i32
    %2 = arith.cmpi ne, %1, %c0_i32_0 : i32
    scf.if %2 {
      %cst_20 = arith.constant 0.000000e+00 : f32
      %26 = vector.broadcast %cst_20 : f32 to vector<1x8x128xf32>
      %c0_21 = arith.constant 0 : index
      %c0_22 = arith.constant 0 : index
      %c0_23 = arith.constant 0 : index
      %27 = vector.load %arg4[%c0_21, %c0_22, %c0_23] : memref<1x8x128xf32, #tpu.memory_space<vmem>>, vector<1x8x128xf32>
      tpu.vector_store %arg4[%c0_21, %c0_22, %c0_23], %26 {strides = array<i32>} : memref<1x8x128xf32, #tpu.memory_space<vmem>>, vector<1x8x128xf32>,
      %cst_24 = arith.constant 0.000000e+00 : f32
      %28 = vector.broadcast %cst_24 : f32 to vector<1x8x128xf32>
      %c0_25 = arith.constant 0 : index
      %c0_26 = arith.constant 0 : index
      %c0_27 = arith.constant 0 : index
      %29 = vector.load %arg5[%c0_25, %c0_26, %c0_27] : memref<1x8x128xf32, #tpu.memory_space<vmem>>, vector<1x8x128xf32>
      tpu.vector_store %arg5[%c0_25, %c0_26, %c0_27], %28 {strides = array<i32>} : memref<1x8x128xf32, #tpu.memory_space<vmem>>, vector<1x8x128xf32>,
    } else {
    }
    %c0 = arith.constant 0 : index
    %c0_1 = arith.constant 0 : index
    %3 = vector.load %arg2[%c0, %c0_1] : memref<8x128xf32, #tpu.memory_space<vmem>>, vector<8x128xf32>
    %c0_2 = arith.constant 0 : index
    %c0_3 = arith.constant 0 : index
    %4 = vector.load %arg3[%c0_2, %c0_3] : memref<8x128xf32, #tpu.memory_space<vmem>>, vector<8x128xf32>
    %cst = arith.constant 5.000000e-01 : f32
    %5 = vector.broadcast %cst : f32 to vector<8x128xf32>
    %6 = arith.mulf %5, %3 : vector<8x128xf32>
    %7 = math.tanh %6 : vector<8x128xf32>
    %cst_4 = arith.constant 1.000000e+00 : f32
    %8 = vector.broadcast %cst_4 : f32 to vector<8x128xf32>
    %9 = arith.addf %7, %8 : vector<8x128xf32>
    %cst_5 = arith.constant 5.000000e-01 : f32
    %10 = vector.broadcast %cst_5 : f32 to vector<8x128xf32>
    %11 = arith.mulf %10, %9 : vector<8x128xf32>
    %12 = arith.mulf %11, %4 : vector<8x128xf32>
    %13 = vector.shape_cast %12 : vector<8x128xf32> to vector<1x8x128xf32>
    %cst_6 = arith.constant dense<0.000000e+00> : vector<8x128xf32>
    %14 = vector.multi_reduction <add>, %13, %cst_6 [0] : vector<1x8x128xf32> to vector<8x128xf32>
    %15 = arith.addf %11, %4 : vector<8x128xf32>
    %16 = vector.shape_cast %15 : vector<8x128xf32> to vector<1x8x128xf32>
    %cst_7 = arith.constant dense<0.000000e+00> : vector<8x128xf32>
    %17 = vector.multi_reduction <add>, %16, %cst_7 [0] : vector<1x8x128xf32> to vector<8x128xf32>
    %c0_8 = arith.constant 0 : index
    %c0_9 = arith.constant 0 : index
    %c0_10 = arith.constant 0 : index
    %18 = vector.load %arg4[%c0_8, %c0_9, %c0_10] : memref<1x8x128xf32, #tpu.memory_space<vmem>>, vector<1x8x128xf32>
    %19 = vector.shape_cast %14 : vector<8x128xf32> to vector<1x8x128xf32>
    %20 = arith.addf %18, %19 : vector<1x8x128xf32>
    %c0_11 = arith.constant 0 : index
    %c0_12 = arith.constant 0 : index
    %c0_13 = arith.constant 0 : index
    %21 = vector.load %arg4[%c0_11, %c0_12, %c0_13] : memref<1x8x128xf32, #tpu.memory_space<vmem>>, vector<1x8x128xf32>
    tpu.vector_store %arg4[%c0_11, %c0_12, %c0_13], %20 {strides = array<i32>} : memref<1x8x128xf32, #tpu.memory_space<vmem>>, vector<1x8x128xf32>,
    %c0_14 = arith.constant 0 : index
    %c0_15 = arith.constant 0 : index
    %c0_16 = arith.constant 0 : index
    %22 = vector.load %arg5[%c0_14, %c0_15, %c0_16] : memref<1x8x128xf32, #tpu.memory_space<vmem>>, vector<1x8x128xf32>
    %23 = vector.shape_cast %17 : vector<8x128xf32> to vector<1x8x128xf32>
    %24 = arith.addf %22, %23 : vector<1x8x128xf32>
    %c0_17 = arith.constant 0 : index
    %c0_18 = arith.constant 0 : index
    %c0_19 = arith.constant 0 : index
    %25 = vector.load %arg5[%c0_17, %c0_18, %c0_19] : memref<1x8x128xf32, #tpu.memory_space<vmem>>, vector<1x8x128xf32>
    tpu.vector_store %arg5[%c0_17, %c0_18, %c0_19], %24 {strides = array<i32>} : memref<1x8x128xf32, #tpu.memory_space<vmem>>, vector<1x8x128xf32>,
    return
  }
  func.func @transform_0(%arg0: i32, %arg1: i32) -> (i32, i32) {
    %c1_i32 = arith.constant 1 : i32
    %0 = arith.muli %arg0, %c1_i32 : i32
    %1 = arith.addi %0, %arg1 : i32
    %c0_i32 = arith.constant 0 : i32
    %c0_i32_0 = arith.constant 0 : i32
    return %1, %c0_i32 : i32, i32
  }
  func.func @transform_1(%arg0: i32, %arg1: i32) -> (i32, i32) {
    %c1_i32 = arith.constant 1 : i32
    %0 = arith.muli %arg0, %c1_i32 : i32
    %1 = arith.addi %0, %arg1 : i32
    %c0_i32 = arith.constant 0 : i32
    %c0_i32_0 = arith.constant 0 : i32
    return %1, %c0_i32 : i32, i32
  }
  func.func @transform_2(%arg0: i32, %arg1: i32) -> (i32, i32, i32) {
    %c0_i32 = arith.constant 0 : i32
    %c0_i32_0 = arith.constant 0 : i32
    %c0_i32_1 = arith.constant 0 : i32
    return %arg0, %c0_i32, %c0_i32_0 : i32, i32, i32
  }
  func.func @transform_3(%arg0: i32, %arg1: i32) -> (i32, i32, i32) {
    %c0_i32 = arith.constant 0 : i32
    %c0_i32_0 = arith.constant 0 : i32
    %c0_i32_1 = arith.constant 0 : i32
    return %arg0, %c0_i32, %c0_i32_0 : i32, i32, i32
  }
}

</mosaic_0001>

<bundles_post_ra>
// kernel: dice_loss.1
= control target key start
LH: loop header
LB: loop body
LE: loop exit
PB: predicated region body
PF: predicated region fallthrough
CT: control target
= control target key end

     0   :  { %s428_s12 = smov 0   ;;  %s430_s13 = smov 0   ;;  %s464_s0 = inlined_call_operand.vmem [shape: f32[16,128], index: 0, kind: input, shape index: {}]   ;;  %s465_s1 = inlined_call_operand.vmem [shape: f32[16,128], index: 1, kind: input, shape index: {}]   ;;  %s466_s2 = inlined_call_operand.vmem [shape: f32[2,8,128], index: 2, kind: output, shape index: {0}]   ;;  %s467_s3 = inlined_call_operand.vmem [shape: f32[2,8,128], index: 3, kind: output, shape index: {1}]  }
   0x1   :  { %s432_s14 = smov 0  }
   0x2 LB: > { %s26_s15 = sadd.s32 1, %s402_s13  ;;  %p350_p0 = scmp.ge.s32.totalorder %s406_s14, 1  ;;  %s406_s14 = sphi %s432_s14, %s14_s14   ;;  %s402_s13 = sphi %s430_s13, %s469_s13   ;;  %s398_s12 = sphi %s428_s12, %s468_s12  }
   0x3   : > { %p28_p1 = scmp.ge.s32.totalorder %s26_s15, 2  ;;  %p168_p2 = scmp.lt.s32.totalorder %s406_s14, 3 }
   0x5   : > { %s471_s15 = smov (%p28_p1, %s26_s15), 0  ;;  %p169_p3 = pnand %p350_p0, %p168_p2 }
   0x6   : > { %p201_p4 = scmp.lt.s32.totalorder (!%p169_p3), %s398_s12, 1 }
   0x7   : > { %172 = sbr.rel (%p169_p3) target bundleno = 33 (0x21), region = 28 }
   0xc   : > { %s473_s12 = smov (!%p201_p4, %s398_s12), 1 }
   0xd   : > { %s351_s16 = sshll.u32 %s473_s12, 3 }
   0xe   : > { %s204_s19 = scalar_lea.vmem %s464_s0, %s351_s16  ;;  %s210_s22 = scalar_lea.vmem %s465_s1, %s351_s16 }
   0xf   : > { %v226_v0 = vld [vmem:[%s204_s19] sm:$0xff]  ;;  %s215_s25 = scalar_lea.vmem %s466_s2, %s351_s16  ;;  %s219_s28 = scalar_lea.vmem %s467_s3, %s351_s16 }
  0x10   : > { %v228_v1 = vmul.f32 0.5, %v226_v0  ;;  %v227_v4 = vld [vmem:[%s210_s22] sm:$0xff] }
  0x12   : > { %382 = vtanh.f32 %v228_v1 }
  0x18   : > { %v383_v2 = vpop.eup %382 }
  0x19   : > { %v230_v3 = vadd.f32 1.0, %v383_v2 }
  0x1b   : > { %v231_v5 = vmul.f32 0.5, %v230_v3 }
  0x1d   : > { %v232_v6 = vmul.f32 %v231_v5, %v227_v4  ;;  %v234_v7 = vadd.f32 %v231_v5, %v227_v4 }
  0x1f   : > { %238 = vst [vmem:[%s215_s25] sm:$0xff] %v232_v6 }
  0x20   : > { %241 = vst [vmem:[%s219_s28] sm:$0xff] %v234_v7 }
  0x21 PF: > { %s14_s14 = sadd.s32 1, %s406_s14   ;;  %s468_s12 = smov %s402_s13 }
  0x22   : > { %p11_p5 = scmp.ge.s32.totalorder %s14_s14, 4   ;;  %s469_s13 = smov %s471_s15 }
  0x24   :  { %13 = sbr.rel (!%p11_p5) target bundleno = 2 (0x2), region = 77 }

</bundles_post_ra>
